<compile_context>
chip_gen: v5e
topology: v5e:2x2
jax: 0.10.0
libtpu: 0.0.40
codegen_flags: <defaults>
</compile_context>

<pallas_src>
import jax
import jax.numpy as jnp
from jax.experimental import pallas as pl
from jax.experimental.pallas import tpu as pltpu

# ---------------- problem sizes (small, consistent with the module) ----------------
BATCH = 2
INPUT_DIM = 16
HIDDEN_DIM = 32
Z_DIM = 8
NUM_SAMPLES = 4
NEG_SLOPE = 0.5          # nn.LeakyReLU(0.5)
LANES = 128              # TPU lane width
LANE_GROUP = 32          # max param width -> 4 column groups per slab row

SB = NUM_SAMPLES * BATCH
# Bias replication trick is only valid when S*B is exactly one sublane group (8).
_BIAS_ROWS = SB if SB == 8 else 1

# bf16 MXU operands only where the hardware is bf16-native (v6e / v7x).
_KIND = jax.devices()[0].device_kind.lower()
USE_BF16 = any(t in _KIND for t in ("v6", "v7", "7x"))
# Keep the fused mu/log-std head ("wmuls") in f32 so exp()/std stay accurate.
_BF16_WEIGHTS = frozenset({"w1", "w2", "wd1", "wd2", "wo"}) if USE_BF16 else frozenset()


def _leaky_relu(v):
    return jnp.where(v > 0, v, NEG_SLOPE * v)


def _round_up(n, m):
    return -(-n // m) * m


# ---------------- static layout of the packed parameter slab ----------------
# (name, (rows, cols)); weights are [in, out], biases logically [1, out]
# (replicated to _BIAS_ROWS rows when packed). mu / log-std heads are fused.
_PARAM_LAYOUT = (
    ("w1", (INPUT_DIM, HIDDEN_DIM)),    ("b1", (1, HIDDEN_DIM)),
    ("w2", (HIDDEN_DIM, HIDDEN_DIM)),   ("b2", (1, HIDDEN_DIM)),
    ("wmuls", (HIDDEN_DIM, 2 * Z_DIM)), ("bmuls", (1, 2 * Z_DIM)),
    ("wd1", (Z_DIM, HIDDEN_DIM)),       ("bd1", (1, HIDDEN_DIM)),
    ("wd2", (HIDDEN_DIM, HIDDEN_DIM)),  ("bd2", (1, HIDDEN_DIM)),
    ("wo", (HIDDEN_DIM, INPUT_DIM)),    ("bo", (1, INPUT_DIM)),
)
_PARAM_SHAPES = dict(_PARAM_LAYOUT)


def _compute_positions():
    """First-fit-decreasing packing into 4 lane groups of 32 lanes each.

    Returns {name: (row_off, lane_off)} and the total slab rows (multiple of 8).
    Every slot is 8-row aligned and 32-lane aligned -> all kernel slices are
    cheap static views.
    """
    n_groups = LANES // LANE_GROUP
    heights = [0] * n_groups
    items = []
    for name, (r, _c) in _PARAM_LAYOUT:
        rows = _round_up(_BIAS_ROWS if r == 1 else r, 8)
        items.append((name, rows))
    pos = {}
    for name, rows in sorted(items, key=lambda it: -it[1]):  # stable -> deterministic
        g = min(range(n_groups), key=lambda i: heights[i])
        pos[name] = (heights[g], g * LANE_GROUP)
        heights[g] += rows
    return pos, _round_up(max(heights), 8)


_PARAM_POS, _PARAM_ROWS = _compute_positions()   # -> [56, 128] f32 slab (28 KiB)


# ---------------- kernel ----------------
def vae_kernel(x_ref, eps_ref, p_ref, out_ref):
    """x_ref:   [S*B, D]  x replicated per sample (S-major rows)
       eps_ref: [S*B, Z]  standard-normal noise for rsample
       p_ref:   [_PARAM_ROWS, 128] densely packed parameter slab (f32)
       out_ref: [S*B, D+3Z]  lanes 0:D = x_gen, D:D+Z = z, +Z = mu, +Z = std
    """
    D, Z = INPUT_DIM, Z_DIM

    def pw(name):                                  # weight view [in, out]
        r, c = _PARAM_SHAPES[name]
        ro, lo = _PARAM_POS[name]
        v = p_ref[ro:ro + r, lo:lo + c]
        if name in _BF16_WEIGHTS:                  # bf16 operands on v6e/v7x only
            v = v.astype(jnp.bfloat16)
        return v

    def pb(name):                                  # bias view [_BIAS_ROWS, out]
        _, c = _PARAM_SHAPES[name]
        ro, lo = _PARAM_POS[name]
        return p_ref[ro:ro + _BIAS_ROWS, lo:lo + c]

    def mm(a, wname):                              # f32-accumulating MXU matmul
        w = pw(wname)
        return jnp.dot(a.astype(w.dtype), w, preferred_element_type=jnp.float32)

    x = x_ref[...]                                 # [S*B, D]
    eps = eps_ref[...]                             # [S*B, Z]

    # ---------------- Encoder Q(z|x) ----------------
    h = _leaky_relu(mm(x, "w1") + pb("b1"))
    h = _leaky_relu(mm(h, "w2") + pb("b2"))
    # fused mean / log-std head (kept f32): one matmul, split by static lane slice
    ms = mm(h, "wmuls") + pb("bmuls")              # [S*B, 2Z]
    mu = ms[:, 0:Z]
    std = jnp.exp(ms[:, Z:2 * Z])

    # ---------------- rsample (reparameterization) ----------------
    z = mu + std * eps                             # [S*B, Z]

    # ---------------- Decoder P(x|z) ----------------
    hd = _leaky_relu(mm(z, "wd1") + pb("bd1"))
    hd = _leaky_relu(mm(hd, "wd2") + pb("bd2"))
    xg = mm(hd, "wo") + pb("bo")                   # [S*B, D]

    # ---------------- direct lane-slice stores (no pad, no concat) ----------------
    out_ref[:, 0:D] = xg
    out_ref[:, D:D + Z] = z
    out_ref[:, D + Z:D + 2 * Z] = mu
    out_ref[:, D + 2 * Z:D + 3 * Z] = std


# ---------------- host-side packing (call ONCE, outside jit) ----------------
def pack_params(params):
    (w1, b1, w2, b2, wmu, bmu, wls, bls, wd1, bd1, wd2, bd2, wo, bo) = params
    fused = {
        "w1": w1, "b1": b1, "w2": w2, "b2": b2,
        "wmuls": jnp.concatenate([wmu, wls], axis=1),
        "bmuls": jnp.concatenate([bmu, bls], axis=1),
        "wd1": wd1, "bd1": bd1, "wd2": wd2, "bd2": bd2, "wo": wo, "bo": bo,
    }
    slab = jnp.zeros((_PARAM_ROWS, LANES), jnp.float32)
    for name, (r, c) in _PARAM_LAYOUT:
        ro, lo = _PARAM_POS[name]
        val = fused[name].astype(jnp.float32)
        if r == 1:  # replicate bias into its full row block -> plain vreg add in-kernel
            val = jnp.broadcast_to(val, (_BIAS_ROWS, c))
        slab = slab.at[ro:ro + val.shape[0], lo:lo + c].set(val)
    return slab


def init_params(key):
    """Deterministic synthetic parameters. Weights stored as [in, out], biases [1, out]."""
    ks = jax.random.split(key, 14)
    def w(k, i, o): return (0.1 * jax.random.normal(k, (i, o))).astype(jnp.float32)
    def b(k, o):    return (0.1 * jax.random.normal(k, (1, o))).astype(jnp.float32)
    return (
        # encoder
        w(ks[0], INPUT_DIM, HIDDEN_DIM),   b(ks[1], HIDDEN_DIM),
        w(ks[2], HIDDEN_DIM, HIDDEN_DIM),  b(ks[3], HIDDEN_DIM),
        w(ks[4], HIDDEN_DIM, Z_DIM),       b(ks[5], Z_DIM),      # mu head
        w(ks[6], HIDDEN_DIM, Z_DIM),       b(ks[7], Z_DIM),      # log-std head
        # decoder
        w(ks[8], Z_DIM, HIDDEN_DIM),       b(ks[9], HIDDEN_DIM),
        w(ks[10], HIDDEN_DIM, HIDDEN_DIM), b(ks[11], HIDDEN_DIM),
        w(ks[12], HIDDEN_DIM, INPUT_DIM),  b(ks[13], INPUT_DIM),
    )


@jax.jit
def vae_forward(x, eps, p_slab):
    """x: [B, D], eps: [S, B, Z], p_slab: pre-packed [_PARAM_ROWS, 128] slab."""
    S, B, Z = eps.shape
    D = x.shape[1]
    nrows = S * B

    # x.unsqueeze(0).repeat(S,1,1) is done wrapper-side; the same replicated rows
    # feed the encoder so the kernel stays fully 2-D. Rows are S-major:
    # row r = (sample r//B, batch r%B).
    x_rep = jnp.broadcast_to(x[None], (S, B, D))
    x_flat = x_rep.reshape(nrows, D)
    eps_flat = eps.reshape(nrows, Z)

    vmem = pl.BlockSpec(memory_space=pltpu.MemorySpace.VMEM)
    out_w = D + 3 * Z
    slab = pl.pallas_call(
        vae_kernel,
        out_shape=jax.ShapeDtypeStruct((nrows, out_w), jnp.float32),
        in_specs=[vmem, vmem, vmem],
        out_specs=vmem,
    )(x_flat, eps_flat, p_slab)

    x_gen = slab[:, 0:D].reshape(S, B, D)
    z_samples = slab[:, D:D + Z].reshape(S, B, Z)
    # mu/std are sample-independent; rows 0:B of the S-major packing are exactly
    # (sample 0, batch 0..B-1), so this extracts the per-batch distribution params.
    z_mean = slab[0:B, D + Z:D + 2 * Z]
    z_std = slab[0:B, D + 2 * Z:D + 3 * Z]
    # z_dist is returned as (mean, std) tensors in place of torch.distributions.Normal.
    return x_gen, x_rep, z_samples, z_mean, z_std


def vae_forward_ref(x, eps, params):
    """Pure-JAX f32 reference (mirrors the PyTorch forward exactly)."""
    (w1, b1, w2, b2, wmu, bmu, wls, bls, wd1, bd1, wd2, bd2, wo, bo) = params
    h = _leaky_relu(x @ w1 + b1)
    h = _leaky_relu(h @ w2 + b2)
    mu = h @ wmu + bmu
    std = jnp.exp(h @ wls + bls)
    z = mu[None] + std[None] * eps
    hd = _leaky_relu(z @ wd1 + bd1)
    hd = _leaky_relu(hd @ wd2 + bd2)
    xg = hd @ wo + bo
    xrep = jnp.broadcast_to(x[None], (eps.shape[0],) + x.shape)
    return xg, xrep, z, mu, std


if __name__ == "__main__":
    key = jax.random.PRNGKey(0)
    k_params, k_x, k_eps = jax.random.split(key, 3)

    params = init_params(k_params)
    x = jax.random.normal(k_x, (BATCH, INPUT_DIM), dtype=jnp.float32)
    # eps for rsample((num_samples,)) -> shape [num_samples, batch, z_dim]
    eps = jax.random.normal(k_eps, (NUM_SAMPLES, BATCH, Z_DIM), dtype=jnp.float32)

    # Param slab is packed ONCE, outside the jitted hot path.
    p_slab = jax.block_until_ready(pack_params(params))

    outs = vae_forward(x, eps, p_slab)
    outs = jax.block_until_ready(outs)

    refs = vae_forward_ref(x, eps, params)
    atol = 5e-2 if USE_BF16 else 1e-5   # bf16 MXU operands on v6e/v7x loosen tolerance
    rtol = 5e-2 if USE_BF16 else 1e-5
    for o, r in zip(outs, refs):
        assert o.shape == r.shape, (o.shape, r.shape)
        assert jnp.allclose(o, r, atol=atol, rtol=rtol), "mismatch vs. reference"

    print("KERNEL_OK")
</pallas_src>

<mosaic_0001>
module attributes {stable_mosaic.version = 11 : i64} {
  func.func @vae_kernel(%arg0: memref<8x16xf32, #tpu.memory_space<vmem>>, %arg1: memref<8x8xf32, #tpu.memory_space<vmem>>, %arg2: memref<56x128xf32, #tpu.memory_space<vmem>>, %arg3: memref<8x40xf32, #tpu.memory_space<vmem>>) attributes {dimension_semantics = [], scalar_prefetch = 0 : i64, scratch_operands = 0 : i64, tpu.core_type = #tpu.core_type<tc>} {
    %c0 = arith.constant 0 : index
    %c0_0 = arith.constant 0 : index
    %0 = vector.load %arg0[%c0, %c0_0] : memref<8x16xf32, #tpu.memory_space<vmem>>, vector<8x16xf32>
    %c0_1 = arith.constant 0 : index
    %c0_2 = arith.constant 0 : index
    %1 = vector.load %arg1[%c0_1, %c0_2] : memref<8x8xf32, #tpu.memory_space<vmem>>, vector<8x8xf32>
    %c32 = arith.constant 32 : index
    %c0_3 = arith.constant 0 : index
    %2 = vector.load %arg2[%c32, %c0_3] : memref<56x128xf32, #tpu.memory_space<vmem>>, vector<16x32xf32>
    %cst = arith.constant dense<0.000000e+00> : vector<8x32xf32>
    %3 = tpu.matmul %0, %2, %cst {dimension_numbers = #tpu.dot_dimension_numbers<[1], [0], [0], [1], [0, 0, 1, 1], [], []>} : vector<8x16xf32>, vector<16x32xf32>, vector<8x32xf32> -> vector<8x32xf32>
    %c32_4 = arith.constant 32 : index
    %c32_5 = arith.constant 32 : index
    %4 = vector.load %arg2[%c32_4, %c32_5] : memref<56x128xf32, #tpu.memory_space<vmem>>, vector<8x32xf32>
    %5 = arith.addf %3, %4 : vector<8x32xf32>
    %cst_6 = arith.constant 0.000000e+00 : f32
    %6 = vector.broadcast %cst_6 : f32 to vector<8x32xf32>
    %7 = arith.cmpf ogt, %5, %6 : vector<8x32xf32>
    %cst_7 = arith.constant 5.000000e-01 : f32
    %8 = vector.broadcast %cst_7 : f32 to vector<8x32xf32>
    %9 = arith.mulf %8, %5 : vector<8x32xf32>
    %10 = arith.select %7, %5, %9 : vector<8x32xi1>, vector<8x32xf32>
    %c0_8 = arith.constant 0 : index
    %c0_9 = arith.constant 0 : index
    %11 = vector.load %arg2[%c0_8, %c0_9] : memref<56x128xf32, #tpu.memory_space<vmem>>, vector<32x32xf32>
    %cst_10 = arith.constant dense<0.000000e+00> : vector<8x32xf32>
    %12 = tpu.matmul %10, %11, %cst_10 {dimension_numbers = #tpu.dot_dimension_numbers<[1], [0], [0], [1], [0, 0, 1, 1], [], []>} : vector<8x32xf32>, vector<32x32xf32>, vector<8x32xf32> -> vector<8x32xf32>
    %c32_11 = arith.constant 32 : index
    %c64 = arith.constant 64 : index
    %13 = vector.load %arg2[%c32_11, %c64] : memref<56x128xf32, #tpu.memory_space<vmem>>, vector<8x32xf32>
    %14 = arith.addf %12, %13 : vector<8x32xf32>
    %cst_12 = arith.constant 0.000000e+00 : f32
    %15 = vector.broadcast %cst_12 : f32 to vector<8x32xf32>
    %16 = arith.cmpf ogt, %14, %15 : vector<8x32xf32>
    %cst_13 = arith.constant 5.000000e-01 : f32
    %17 = vector.broadcast %cst_13 : f32 to vector<8x32xf32>
    %18 = arith.mulf %17, %14 : vector<8x32xf32>
    %19 = arith.select %16, %14, %18 : vector<8x32xi1>, vector<8x32xf32>
    %c0_14 = arith.constant 0 : index
    %c32_15 = arith.constant 32 : index
    %20 = vector.load %arg2[%c0_14, %c32_15] : memref<56x128xf32, #tpu.memory_space<vmem>>, vector<32x16xf32>
    %cst_16 = arith.constant dense<0.000000e+00> : vector<8x16xf32>
    %21 = tpu.matmul %19, %20, %cst_16 {dimension_numbers = #tpu.dot_dimension_numbers<[1], [0], [0], [1], [0, 0, 1, 1], [], []>} : vector<8x32xf32>, vector<32x16xf32>, vector<8x16xf32> -> vector<8x16xf32>
    %c32_17 = arith.constant 32 : index
    %c96 = arith.constant 96 : index
    %22 = vector.load %arg2[%c32_17, %c96] : memref<56x128xf32, #tpu.memory_space<vmem>>, vector<8x16xf32>
    %23 = arith.addf %21, %22 : vector<8x16xf32>
    %24 = vector.extract_strided_slice %23 {offsets = [0, 0], sizes = [8, 8], strides = [1, 1]} : vector<8x16xf32> to vector<8x8xf32>
    %25 = vector.extract_strided_slice %23 {offsets = [0, 8], sizes = [8, 8], strides = [1, 1]} : vector<8x16xf32> to vector<8x8xf32>
    %26 = math.exp %25 : vector<8x8xf32>
    %27 = arith.mulf %26, %1 : vector<8x8xf32>
    %28 = arith.addf %24, %27 : vector<8x8xf32>
    %c40 = arith.constant 40 : index
    %c32_18 = arith.constant 32 : index
    %29 = vector.load %arg2[%c40, %c32_18] : memref<56x128xf32, #tpu.memory_space<vmem>>, vector<8x32xf32>
    %cst_19 = arith.constant dense<0.000000e+00> : vector<8x32xf32>
    %30 = tpu.matmul %28, %29, %cst_19 {dimension_numbers = #tpu.dot_dimension_numbers<[1], [0], [0], [1], [0, 0, 1, 1], [], []>} : vector<8x8xf32>, vector<8x32xf32>, vector<8x32xf32> -> vector<8x32xf32>
    %c40_20 = arith.constant 40 : index
    %c64_21 = arith.constant 64 : index
    %31 = vector.load %arg2[%c40_20, %c64_21] : memref<56x128xf32, #tpu.memory_space<vmem>>, vector<8x32xf32>
    %32 = arith.addf %30, %31 : vector<8x32xf32>
    %cst_22 = arith.constant 0.000000e+00 : f32
    %33 = vector.broadcast %cst_22 : f32 to vector<8x32xf32>
    %34 = arith.cmpf ogt, %32, %33 : vector<8x32xf32>
    %cst_23 = arith.constant 5.000000e-01 : f32
    %35 = vector.broadcast %cst_23 : f32 to vector<8x32xf32>
    %36 = arith.mulf %35, %32 : vector<8x32xf32>
    %37 = arith.select %34, %32, %36 : vector<8x32xi1>, vector<8x32xf32>
    %c0_24 = arith.constant 0 : index
    %c64_25 = arith.constant 64 : index
    %38 = vector.load %arg2[%c0_24, %c64_25] : memref<56x128xf32, #tpu.memory_space<vmem>>, vector<32x32xf32>
    %cst_26 = arith.constant dense<0.000000e+00> : vector<8x32xf32>
    %39 = tpu.matmul %37, %38, %cst_26 {dimension_numbers = #tpu.dot_dimension_numbers<[1], [0], [0], [1], [0, 0, 1, 1], [], []>} : vector<8x32xf32>, vector<32x32xf32>, vector<8x32xf32> -> vector<8x32xf32>
    %c40_27 = arith.constant 40 : index
    %c96_28 = arith.constant 96 : index
    %40 = vector.load %arg2[%c40_27, %c96_28] : memref<56x128xf32, #tpu.memory_space<vmem>>, vector<8x32xf32>
    %41 = arith.addf %39, %40 : vector<8x32xf32>
    %cst_29 = arith.constant 0.000000e+00 : f32
    %42 = vector.broadcast %cst_29 : f32 to vector<8x32xf32>
    %43 = arith.cmpf ogt, %41, %42 : vector<8x32xf32>
    %cst_30 = arith.constant 5.000000e-01 : f32
    %44 = vector.broadcast %cst_30 : f32 to vector<8x32xf32>
    %45 = arith.mulf %44, %41 : vector<8x32xf32>
    %46 = arith.select %43, %41, %45 : vector<8x32xi1>, vector<8x32xf32>
    %c0_31 = arith.constant 0 : index
    %c96_32 = arith.constant 96 : index
    %47 = vector.load %arg2[%c0_31, %c96_32] : memref<56x128xf32, #tpu.memory_space<vmem>>, vector<32x16xf32>
    %cst_33 = arith.constant dense<0.000000e+00> : vector<8x16xf32>
    %48 = tpu.matmul %46, %47, %cst_33 {dimension_numbers = #tpu.dot_dimension_numbers<[1], [0], [0], [1], [0, 0, 1, 1], [], []>} : vector<8x32xf32>, vector<32x16xf32>, vector<8x16xf32> -> vector<8x16xf32>
    %c48 = arith.constant 48 : index
    %c0_34 = arith.constant 0 : index
    %49 = vector.load %arg2[%c48, %c0_34] : memref<56x128xf32, #tpu.memory_space<vmem>>, vector<8x16xf32>
    %50 = arith.addf %48, %49 : vector<8x16xf32>
    %c0_35 = arith.constant 0 : index
    %c0_36 = arith.constant 0 : index
    %51 = vector.load %arg3[%c0_35, %c0_36] : memref<8x40xf32, #tpu.memory_space<vmem>>, vector<8x16xf32>
    tpu.vector_store %arg3[%c0_35, %c0_36], %50 {strides = array<i32>} : memref<8x40xf32, #tpu.memory_space<vmem>>, vector<8x16xf32>,
    %c0_37 = arith.constant 0 : index
    %c16 = arith.constant 16 : index
    %52 = vector.load %arg3[%c0_37, %c16] : memref<8x40xf32, #tpu.memory_space<vmem>>, vector<8x8xf32>
    tpu.vector_store %arg3[%c0_37, %c16], %28 {strides = array<i32>} : memref<8x40xf32, #tpu.memory_space<vmem>>, vector<8x8xf32>,
    %c0_38 = arith.constant 0 : index
    %c24 = arith.constant 24 : index
    %53 = vector.load %arg3[%c0_38, %c24] : memref<8x40xf32, #tpu.memory_space<vmem>>, vector<8x8xf32>
    tpu.vector_store %arg3[%c0_38, %c24], %24 {strides = array<i32>} : memref<8x40xf32, #tpu.memory_space<vmem>>, vector<8x8xf32>,
    %c0_39 = arith.constant 0 : index
    %c32_40 = arith.constant 32 : index
    %54 = vector.load %arg3[%c0_39, %c32_40] : memref<8x40xf32, #tpu.memory_space<vmem>>, vector<8x8xf32>
    tpu.vector_store %arg3[%c0_39, %c32_40], %26 {strides = array<i32>} : memref<8x40xf32, #tpu.memory_space<vmem>>, vector<8x8xf32>,
    return
  }
}

</mosaic_0001>

<bundles_post_ra>
// kernel: vae_forward.1
= control target key start
LH: loop header
LB: loop body
LE: loop exit
PB: predicated region body
PF: predicated region fallthrough
CT: control target
= control target key end

     0   :  { %8 = vsyncpa [#allocation3], 0  ;;  %s360_s15 = smov [#allocation2]   ;;  %s361_s17 = smov 128   ;;  %s432_s0 = inlined_call_operand.vmem [shape: f32[8,16], index: 0, kind: input, shape index: {}]   ;;  %s433_s1 = inlined_call_operand.vmem [shape: f32[8,8], index: 1, kind: input, shape index: {}]   ;;  %s434_s2 = inlined_call_operand.hbm [shape: f32[56,128], index: 2, kind: input, shape index: {}]   ;;  %s435_s3 = inlined_call_operand.vmem [shape: f32[8,40], index: 3, kind: output, shape index: {}]  }
   0x1   :  { %s17_s14 = sshll.u32 %s434_s2, 4  ;;  %s19_s16 = sshll.u32 %s360_s15, 4  ;;  %s18_s14 = int_to_ptr.hbm [resolvable:$true] %s17_s14  ;;  %s20_s16 = int_to_ptr.vmem [resolvable:$true] %s19_s16 }
   0x2   :  { %s362_s18 = smov 8  }
   0x3   :  { %25 = dma.hbm_to_vmem [thread:$0]  %s18_s14, 896, %s20_s16, [#allocation3], %s361_s17, %s361_s17, %s362_s18  }
   0x4   :  { %358 = dma.done.wait [#allocation3], 896  }
   0x5   :  { %359 = vsyncadd [#allocation3], 4294966400  ;;  %v393_v0 = vld [vmem:[#allocation2 + $0x28] sm:$0xff]  ;;  %v32_v1 = vld [vmem:[#allocation2 + $0x20] sm:$0xff]  ;;  %vm38_vm0 = vcmask 130048   ;;  %s363_s2 = smov 96  }
   0x6   :  { %56 = vmatpush.msra.mxu0 %v393_v0  ;;  %v30_v2 = vld [vmem:[%s432_s0] sm:$0xff]  ;;  %35 = vrot.lane.b32.xlu0 %v32_v1, %s363_s2  ;;  %v68_v3 = vld [vmem:[#allocation2 + $0x18] sm:$0xff]  ;;  %s364_s21 = smov 64   ;;  %v67_v4 = vld [vmem:[#allocation2 + $0x10] sm:$0xff]  ;;  %vm72_vm2 = vcmask 261120   ;;  %s365_s0 = smov 32  }
   0x7   :  { %88 = vmatpush.msra.mxu1 %v68_v3  ;;  %69 = vrot.lane.b32.xlu1 %v32_v1, %s364_s21  ;;  %v66_v5 = vld [vmem:[#allocation2 + $0x8] sm:$0xff]  ;;  %v65_v6 = vld [vmem:[#allocation2] sm:$0xff]  ;;  %v302_v7 = vpack.i.bf16 %v67_v4, %v68_v3  ;;  %s367_s24 = smov 120   ;;  %vm160_vm4 = vcmask 64512   ;;  %s368_s25 = smov 16   ;;  %v228_v58 = vld [vmem:[#allocation2 + $0x30] sm:$0xff] }
   0x8   :  { %57 = vmatpush.msra.mxu0 %v32_v1  ;;  %v307_v8 = vpack.i.bf16 %v65_v6, %v66_v5  ;;  %115 = vrot.lane.b32.xlu2 %v32_v1, %s365_s0  ;;  %v31_v21 = vld [vmem:[%s433_s1] sm:$0xff]  ;;  %s366_s1 = smov 24   ;;  %vm268_vm7 = vcmask 195712   ;;  %vm274_vm8 = vcmask 261312   ;;  %vm280_vm9 = vcmask 326912  }
   0x9   :  { %287 = vmatmul.msk.f32.vlgmr.msra.gmra.mxu0 %vm38_vm0, %v30_v2  ;;  %89 = vmatpush.msra.mxu1 %v67_v4 }
   0xb   :  { %90 = vmatpush.msra.mxu1 %v66_v5 }
   0xd   :  { %91 = vmatpush.msra.mxu1 %v65_v6 }
   0xe   :  { %303 = vrot.lane.b32.xlu0 %v302_v7, %s363_s2 }
   0xf   :  { %308 = vrot.lane.b32.xlu1 %v307_v8, %s363_s2 }
  0x10   :  { %144 = vrot.lane.b32.xlu2 %v31_v21, %s362_s18 }
  0x17   :  { %154 = vrot.lane.b32.xlu1 %v393_v0, %s363_s2 }
  0x18   :  { %313 = vrot.lane.b32.xlu2 %v302_v7, %s364_s21 }
  0x1f   :  { %318 = vrot.lane.b32.xlu1 %v307_v8, %s364_s21 }
  0x20   :  { %323 = vrot.lane.b32.xlu2 %v302_v7, %s365_s0 }
  0x27   :  { %328 = vrot.lane.b32.xlu1 %v307_v8, %s365_s0 }
  0x62   :  { %v116_v26 = vpop.permute.xlu2 %115 }
  0x6a   :  { %v145_v31 = vpop.permute.xlu2 %144 }
  0x72   :  { %v314_v36 = vpop.permute.xlu2 %313 }
  0x73   :  { %v315_v37 = vunpack.i.l.bf16 %v314_v36  ;;  %v316_v38 = vunpack.i.h.bf16 %v314_v36 }
  0x78   :  { %v36_v9 = vpop.permute.xlu0 %35 }
  0x79   :  { %v70_v14 = vpop.permute.xlu1 %69 }
  0x7a   :  { %v324_v42 = vpop.permute.xlu2 %323 }
  0x7b   :  { %v325_v43 = vunpack.i.l.bf16 %v324_v42  ;;  %v326_v44 = vunpack.i.h.bf16 %v324_v42 }
  0x7d   :  { %256 = vmatpush.msrb.mxu0 %v325_v43 }
  0x7f   :  { %257 = vmatpush.msrb.mxu0 %v326_v44 }
  0x80   :  { %v304_v15 = vpop.permute.xlu0 %303 }
  0x81   :  { %v305_v16 = vunpack.i.l.bf16 %v304_v15  ;;  %v306_v17 = vunpack.i.h.bf16 %v304_v15  ;;  %v309_v18 = vpop.permute.xlu1 %308 }
  0x82   :  { %v310_v19 = vunpack.i.l.bf16 %v309_v18  ;;  %v311_v20 = vunpack.i.h.bf16 %v309_v18 }
  0x83   :  { %133 = vmatpush.msra.mxu2 %v305_v16 }
  0x85   :  { %134 = vmatpush.msra.mxu2 %v306_v17 }
  0x86   :  { %v59_v10 = vpop.f32.mrf.mxu0 }
  0x87   :  { %v60_v11 = vadd.f32 %v59_v10, %v36_v9  ;;  %135 = vmatpush.msra.mxu2 %v310_v19 }
  0x89   :  { %v63_v12 = vmul.f32 0.5, %v60_v11  ;;  %vm62_vm1 = vcmp.gt.f32.partialorder %v60_v11, 0.0  ;;  %136 = vmatpush.msra.mxu2 %v311_v20  ;;  %v155_v30 = vpop.permute.xlu1 %154 }
  0x8a   :  { %179 = vmatpush.msra.mxu3 %v155_v30 }
  0x8b   :  { %v64_v13 = vsel %vm62_vm1, %v60_v11, %v63_v12 }
  0x8c   :  { %288 = vmatmul.msk.f32.vlgmr.msra.gmra.mxu1 %vm72_vm2, %v64_v13  ;;  %217 = vmatpush.msrb.mxu3 %v315_v37 }
  0x8e   :  { %218 = vmatpush.msrb.mxu3 %v316_v38 }
  0x91   :  { %v319_v39 = vpop.permute.xlu1 %318 }
  0x92   :  { %v320_v40 = vunpack.i.l.bf16 %v319_v39  ;;  %v321_v41 = vunpack.i.h.bf16 %v319_v39 }
  0x94   :  { %219 = vmatpush.msrb.mxu3 %v320_v40 }
  0x96   :  { %220 = vmatpush.msrb.mxu3 %v321_v41 }
  0x99   :  { %v329_v50 = vpop.permute.xlu1 %328 }
  0x9a   :  { %v330_v51 = vunpack.i.l.bf16 %v329_v50  ;;  %v331_v52 = vunpack.i.h.bf16 %v329_v50 }
  0x9c   :  { %258 = vmatpush.msrb.mxu0 %v330_v51 }
  0x9e   :  { %259 = vmatpush.msrb.mxu0 %v331_v52 }
 0x109   :  { %v93_v22 = vpop.f32.mrf.mxu1 }
 0x10a   :  { %v94_v23 = vadd.f32 %v93_v22, %v70_v14 }
 0x10c   :  { %v97_v24 = vmul.f32 0.5, %v94_v23  ;;  %vm96_vm3 = vcmp.gt.f32.partialorder %v94_v23, 0.0 }
 0x10e   :  { %v98_v25 = vsel %vm96_vm3, %v94_v23, %v97_v24 }
 0x10f   :  { %289 = vmatmul.msk.f32.vlgmr.msra.gmra.mxu2 %vm72_vm2, %v98_v25 }
 0x192   :  { %v138_v27 = vpop.f32.mrf.mxu2 }
 0x193   :  { %v139_v28 = vadd.f32 %v138_v27, %v116_v26 }
 0x195   :  { %v141_v29 = vmul.f32 1.442695, %v139_v28 }
 0x197   :  { %332 = vpow2.f32 %v141_v29 }
 0x19d   :  { %v333_v32 = vpop.eup %332 }
 0x19e   :  { %v147_v33 = vmul.f32 %v333_v32, %v145_v31  ;;  %277 = vrot.lane.b32.xlu1 %v333_v32, %s366_s1 }
 0x1a0   :  { %149 = vrot.lane.b32.xlu0 %v147_v33, %s367_s24 }
 0x1a8   :  { %157 = vrot.lane.b32.xlu0 %v393_v0, %s364_s21 }
 0x1b0   :  { %199 = vrot.lane.b32.xlu0 %v393_v0, %s365_s0 }
 0x1b8   :  { %271 = vrot.lane.b32.xlu0 %v139_v28, %s366_s1 }
 0x210   :  { %v278_v63 = vpop.permute.xlu1 %277 }
 0x212   :  { %v150_v34 = vpop.permute.xlu0 %149 }
 0x213   :  { %v152_v35 = vadd.f32 %v150_v34, %v139_v28 }
 0x215   :  { %265 = vrot.lane.b32.xlu2 %v152_v35, %s368_s25  ;;  %290 = vmatmul.msk.f32.vlgmr.msra.gmra.mxu3 %vm160_vm4, %v152_v35 }
 0x21a   :  { %v158_v45 = vpop.permute.xlu0 %157 }
 0x222   :  { %v200_v53 = vpop.permute.xlu0 %199 }
 0x22a   :  { %v272_v62 = vpop.permute.xlu0 %271 }
 0x26f   :  { %v266_v61 = vpop.permute.xlu2 %265 }
 0x298   :  { %v181_v46 = vpop.f32.mrf.mxu3 }
 0x299   :  { %v182_v47 = vadd.f32 %v181_v46, %v158_v45 }
 0x29b   :  { %vm184_vm5 = vcmp.gt.f32.partialorder %v182_v47, 0.0  ;;  %v185_v48 = vmul.f32 0.5, %v182_v47 }
 0x29d   :  { %v186_v49 = vsel %vm184_vm5, %v182_v47, %v185_v48 }
 0x29e   :  { %291 = vmatmul.msk.f32.vlgmr.msrb.gmra.mxu3 %vm72_vm2, %v186_v49 }
 0x321   :  { %v222_v54 = vpop.f32.mrf.mxu3 }
 0x322   :  { %v223_v55 = vadd.f32 %v222_v54, %v200_v53 }
 0x324   :  { %vm225_vm6 = vcmp.gt.f32.partialorder %v223_v55, 0.0  ;;  %v226_v56 = vmul.f32 0.5, %v223_v55 }
 0x326   :  { %v227_v57 = vsel %vm225_vm6, %v223_v55, %v226_v56 }
 0x327   :  { %292 = vmatmul.msk.f32.vlgmr.msrb.gmra.mxu0 %vm72_vm2, %v227_v57 }
 0x3a4   :  { %v261_v59 = vpop.f32.mrf.mxu0 }
 0x3a5   :  { %v262_v60 = vadd.f32 %v261_v59, %v228_v58 }
 0x3a7   :  { %264 = vst.msk [vmem:[%s435_s3] sm:$0xff] %vm38_vm0, %v262_v60 }
 0x3a8   :  { %269 = vst.msk [vmem:[%s435_s3] sm:$0xff] %vm268_vm7, %v266_v61 }
 0x3a9   :  { %275 = vst.msk [vmem:[%s435_s3] sm:$0xff] %vm274_vm8, %v272_v62 }
 0x3aa   :  { %281 = vst.msk [vmem:[%s435_s3] sm:$0xff] %vm280_vm9, %v278_v63 }
 0x3ab   :  { %286 = vsyncpa [#allocation3], 1 }

</bundles_post_ra>
